<compile_context>
chip_gen: v6e
topology: v6e:2x2x1
jax: 0.10.0
libtpu: 0.0.40
codegen_flags: <defaults>
</compile_context>

<pallas_src>
import jax
import jax.numpy as jnp
from jax.experimental import pallas as pl
from jax.experimental.pallas import tpu as pltpu

STATE_DIM = 10
ACTION_DIM = 5
BOOST_LEVELS = 5      # must equal ACTION_DIM for the cost/boost_probs broadcast
HIDDEN = 128
TACT = 0.5


def _round_up(x, m):
    return (x + m - 1) // m * m


def _action_selection_kernel(s_ref, bp_ref, w1a_ref, w1b_ref, b1_ref,
                             w2_ref, b2_ref, cost_ref, o_ref):
    # fc1 + ReLU. The concat is fused away by splitting W1 into a state half
    # and a boost half. MXU runs bf16, accumulation stays f32.
    s16 = s_ref[...].astype(jnp.bfloat16)                       # (T, STATE_DIM)
    bp = bp_ref[...]                                            # (T, BL) f32
    h = jnp.dot(s16, w1a_ref[...], preferred_element_type=jnp.float32)
    h = h + jnp.dot(bp.astype(jnp.bfloat16), w1b_ref[...],
                    preferred_element_type=jnp.float32)
    h = jnp.maximum(h + b1_ref[...], 0.0)                       # (T, HIDDEN)

    # fc2 -- 1/Tact is already folded into w2 / b2 at pack time.
    logits = jnp.dot(h.astype(jnp.bfloat16), w2_ref[...],
                     preferred_element_type=jnp.float32) + b2_ref[...]  # (T, ACT)

    # penalty = cost / boost_probs. Exact reciprocal: it feeds the logits
    # directly and is amplified where boost_probs is small; (T, 5) is a
    # handful of vregs, so the exact path is essentially free.
    penalty = cost_ref[...] * pl.reciprocal(bp, approx=False)   # (T, ACT)

    # Numerically stable softmax over the action (lane) axis.
    z = logits - penalty
    z = z - jnp.max(z, axis=1, keepdims=True)
    e = jnp.exp(z)
    inv_sum = pl.reciprocal(jnp.sum(e, axis=1, keepdims=True), approx=False)
    o_ref[...] = (e * inv_sum).astype(o_ref.dtype)


def action_selection_forward(state, boost_probs, packed_params, *, tile_b=2048):
    """state: (B, STATE_DIM) f32, boost_probs: (B, BOOST_LEVELS) f32 -> (B, ACTION_DIM) f32."""
    assert ACTION_DIM == BOOST_LEVELS, (
        "cost / boost_probs broadcast in the reference requires "
        "action_dim == boost_levels")
    w1a, w1b, b1, w2s, b2s, cost_row = packed_params
    B = state.shape[0]

    # Sublane-aligned batch tile, capped so there are >= 2 grid steps
    # (v7x megacore parallel axis). Ragged tails are handled by Pallas
    # boundary masking -- no wrapper-side jnp.pad.
    tile_b = max(8, min(tile_b, _round_up(pl.cdiv(B, 2), 8)))
    grid = (pl.cdiv(B, tile_b),)

    def row_spec(feat):
        return pl.BlockSpec((tile_b, feat), lambda i: (i, 0))

    def resident(arr):
        # Weights / biases / cost stay VMEM-resident across all grid steps.
        return pl.BlockSpec(arr.shape, lambda i: (0, 0))

    return pl.pallas_call(
        _action_selection_kernel,
        out_shape=jax.ShapeDtypeStruct((B, ACTION_DIM), jnp.float32),
        grid=grid,
        in_specs=[
            row_spec(STATE_DIM),        # state tile
            row_spec(BOOST_LEVELS),     # boost_probs tile
            resident(w1a),
            resident(w1b),
            resident(b1),
            resident(w2s),
            resident(b2s),
            resident(cost_row),
        ],
        out_specs=pl.BlockSpec((tile_b, ACTION_DIM), lambda i: (i, 0)),
        compiler_params=pltpu.CompilerParams(
            dimension_semantics=("parallel",),       # shard batch across TCs
            vmem_limit_bytes=32 * 1024 * 1024),
    )(state, boost_probs, w1a, w1b, b1, w2s, b2s, cost_row)


def init_params(key):
    """Deterministic init matching nn.Linear / nn.Parameter shapes (f32 master)."""
    k1, k2, k3, k4, k5 = jax.random.split(key, 5)
    in1 = STATE_DIM + BOOST_LEVELS
    lim1 = 1.0 / jnp.sqrt(in1)
    lim2 = 1.0 / jnp.sqrt(HIDDEN)
    # Stored transposed relative to PyTorch (in_features, out_features) so the
    # kernel computes x @ W directly.
    w1 = jax.random.uniform(k1, (in1, HIDDEN), jnp.float32, -lim1, lim1)
    b1 = jax.random.uniform(k2, (1, HIDDEN), jnp.float32, -lim1, lim1)
    w2 = jax.random.uniform(k3, (HIDDEN, ACTION_DIM), jnp.float32, -lim2, lim2)
    b2 = jax.random.uniform(k4, (1, ACTION_DIM), jnp.float32, -lim2, lim2)
    cost = jax.random.normal(k5, (ACTION_DIM,), jnp.float32)
    return w1, b1, w2, b2, cost


def pack_params(w1, b1, w2, b2, cost):
    """One-time host-side transform into the kernel-friendly layout."""
    w1a = w1[:STATE_DIM].astype(jnp.bfloat16)          # (STATE_DIM, HIDDEN) bf16
    w1b = w1[STATE_DIM:].astype(jnp.bfloat16)          # (BOOST_LEVELS, HIDDEN) bf16
    # Fold 1/Tact into fc2 (1/Tact = 2.0, exact scaling even after bf16 cast).
    w2s = (w2 * (1.0 / TACT)).astype(jnp.bfloat16)     # (HIDDEN, ACTION_DIM) bf16
    b2s = b2 * (1.0 / TACT)                            # (1, ACTION_DIM) f32
    cost_row = cost.reshape(1, ACTION_DIM)             # (1, ACTION_DIM) f32
    return w1a, w1b, b1, w2s, b2s, cost_row


def reference_forward(state, boost_probs, w1, b1, w2, b2, cost):
    """Pure-JAX f32 reference matching the PyTorch forward."""
    x = jnp.concatenate([state, boost_probs], axis=1)
    h = jnp.maximum(x @ w1 + b1, 0.0)
    logits = h @ w2 + b2
    z = logits / TACT - cost / boost_probs
    return jax.nn.softmax(z, axis=1)


if __name__ == "__main__":
    key = jax.random.PRNGKey(0)
    kp, ks, kb, ks2, kb2 = jax.random.split(key, 5)

    w1, b1, w2, b2, cost = init_params(kp)
    packed = pack_params(w1, b1, w2, b2, cost)

    # --- tile-aligned batch (2 parallel grid steps at tile_b=8) ---
    B = 16
    state = jax.random.normal(ks, (B, STATE_DIM), jnp.float32)
    boost_probs = jax.nn.softmax(
        jax.random.normal(kb, (B, BOOST_LEVELS), jnp.float32), axis=1)

    out = action_selection_forward(state, boost_probs, packed)
    jax.block_until_ready(out)
    ref = reference_forward(state, boost_probs, w1, b1, w2, b2, cost)

    assert out.shape == (B, ACTION_DIM)
    assert bool(jnp.all(jnp.isfinite(out)))
    # exact softmax normalization -> rows sum to 1 up to f32 rounding
    assert bool(jnp.allclose(jnp.sum(out, axis=1), 1.0, atol=1e-4))
    # bf16 matmuls with f32 accumulation -> loose-ish tolerance vs f32 reference
    assert bool(jnp.allclose(out, ref, atol=5e-2))

    # --- ragged batch (not a multiple of the tile): Pallas boundary masking,
    # no wrapper-side padding ---
    B2 = 13
    state2 = jax.random.normal(ks2, (B2, STATE_DIM), jnp.float32)
    boost2 = jax.nn.softmax(
        jax.random.normal(kb2, (B2, BOOST_LEVELS), jnp.float32), axis=1)
    out2 = action_selection_forward(state2, boost2, packed)
    jax.block_until_ready(out2)
    ref2 = reference_forward(state2, boost2, w1, b1, w2, b2, cost)
    assert out2.shape == (B2, ACTION_DIM)
    assert bool(jnp.all(jnp.isfinite(out2)))
    assert bool(jnp.allclose(jnp.sum(out2, axis=1), 1.0, atol=1e-4))
    assert bool(jnp.allclose(out2, ref2, atol=5e-2))

    print("KERNEL_OK")
</pallas_src>

<mosaic_0001>
module attributes {stable_mosaic.version = 11 : i64} {
  func.func @_action_selection_kernel(%arg0: i32, %arg1: memref<8x10xf32, #tpu.memory_space<vmem>>, %arg2: memref<8x5xf32, #tpu.memory_space<vmem>>, %arg3: memref<10x128xbf16, #tpu.memory_space<vmem>>, %arg4: memref<5x128xbf16, #tpu.memory_space<vmem>>, %arg5: memref<1x128xf32, #tpu.memory_space<vmem>>, %arg6: memref<128x5xbf16, #tpu.memory_space<vmem>>, %arg7: memref<1x5xf32, #tpu.memory_space<vmem>>, %arg8: memref<1x5xf32, #tpu.memory_space<vmem>>, %arg9: memref<8x5xf32, #tpu.memory_space<vmem>>) attributes {dimension_semantics = [#tpu.dimension_semantics<parallel>], iteration_bounds = array<i64: 2>, scalar_prefetch = 0 : i64, scratch_operands = 0 : i64, tpu.core_type = #tpu.core_type<tc>, window_params = [{transform_indices = @transform_0, window_bounds = array<i64: 8, 10>}, {transform_indices = @transform_1, window_bounds = array<i64: 8, 5>}, {pipeline_mode = #tpu.pipeline_mode<synchronous>, transform_indices = @transform_2, window_bounds = array<i64: 10, 128>}, {pipeline_mode = #tpu.pipeline_mode<synchronous>, transform_indices = @transform_3, window_bounds = array<i64: 5, 128>}, {pipeline_mode = #tpu.pipeline_mode<synchronous>, transform_indices = @transform_4, window_bounds = array<i64: 1, 128>}, {pipeline_mode = #tpu.pipeline_mode<synchronous>, transform_indices = @transform_5, window_bounds = array<i64: 128, 5>}, {pipeline_mode = #tpu.pipeline_mode<synchronous>, transform_indices = @transform_6, window_bounds = array<i64: 1, 5>}, {pipeline_mode = #tpu.pipeline_mode<synchronous>, transform_indices = @transform_7, window_bounds = array<i64: 1, 5>}, {transform_indices = @transform_8, window_bounds = array<i64: 8, 5>}]} {
    %c0 = arith.constant 0 : index
    %c0_0 = arith.constant 0 : index
    %0 = vector.load %arg1[%c0, %c0_0] : memref<8x10xf32, #tpu.memory_space<vmem>>, vector<8x10xf32>
    %1 = arith.truncf %0 : vector<8x10xf32> to vector<8x10xbf16>
    %c0_1 = arith.constant 0 : index
    %c0_2 = arith.constant 0 : index
    %2 = vector.load %arg2[%c0_1, %c0_2] : memref<8x5xf32, #tpu.memory_space<vmem>>, vector<8x5xf32>
    %c0_3 = arith.constant 0 : index
    %c0_4 = arith.constant 0 : index
    %3 = vector.load %arg3[%c0_3, %c0_4] : memref<10x128xbf16, #tpu.memory_space<vmem>>, vector<10x128xbf16>
    %cst = arith.constant dense<0.000000e+00> : vector<8x128xf32>
    %4 = tpu.matmul %1, %3, %cst {dimension_numbers = #tpu.dot_dimension_numbers<[1], [0], [0], [1], [0, 0, 1, 1], [], []>} : vector<8x10xbf16>, vector<10x128xbf16>, vector<8x128xf32> -> vector<8x128xf32>
    %5 = arith.truncf %2 : vector<8x5xf32> to vector<8x5xbf16>
    %c0_5 = arith.constant 0 : index
    %c0_6 = arith.constant 0 : index
    %6 = vector.load %arg4[%c0_5, %c0_6] : memref<5x128xbf16, #tpu.memory_space<vmem>>, vector<5x128xbf16>
    %cst_7 = arith.constant dense<0.000000e+00> : vector<8x128xf32>
    %7 = tpu.matmul %5, %6, %cst_7 {dimension_numbers = #tpu.dot_dimension_numbers<[1], [0], [0], [1], [0, 0, 1, 1], [], []>} : vector<8x5xbf16>, vector<5x128xbf16>, vector<8x128xf32> -> vector<8x128xf32>
    %8 = arith.addf %4, %7 : vector<8x128xf32>
    %c0_8 = arith.constant 0 : index
    %c0_9 = arith.constant 0 : index
    %9 = vector.load %arg5[%c0_8, %c0_9] : memref<1x128xf32, #tpu.memory_space<vmem>>, vector<1x128xf32>
    %10 = vector.broadcast %9 : vector<1x128xf32> to vector<8x128xf32>
    %11 = arith.addf %8, %10 : vector<8x128xf32>
    %cst_10 = arith.constant 0.000000e+00 : f32
    %12 = vector.broadcast %cst_10 : f32 to vector<8x128xf32>
    %13 = arith.maximumf %11, %12 : vector<8x128xf32>
    %14 = arith.truncf %13 : vector<8x128xf32> to vector<8x128xbf16>
    %c0_11 = arith.constant 0 : index
    %c0_12 = arith.constant 0 : index
    %15 = vector.load %arg6[%c0_11, %c0_12] : memref<128x5xbf16, #tpu.memory_space<vmem>>, vector<128x5xbf16>
    %cst_13 = arith.constant dense<0.000000e+00> : vector<8x5xf32>
    %16 = tpu.matmul %14, %15, %cst_13 {dimension_numbers = #tpu.dot_dimension_numbers<[1], [0], [0], [1], [0, 0, 1, 1], [], []>} : vector<8x128xbf16>, vector<128x5xbf16>, vector<8x5xf32> -> vector<8x5xf32>
    %c0_14 = arith.constant 0 : index
    %c0_15 = arith.constant 0 : index
    %17 = vector.load %arg7[%c0_14, %c0_15] : memref<1x5xf32, #tpu.memory_space<vmem>>, vector<1x5xf32>
    %18 = vector.broadcast %17 : vector<1x5xf32> to vector<8x5xf32>
    %19 = arith.addf %16, %18 : vector<8x5xf32>
    %c0_16 = arith.constant 0 : index
    %c0_17 = arith.constant 0 : index
    %20 = vector.load %arg8[%c0_16, %c0_17] : memref<1x5xf32, #tpu.memory_space<vmem>>, vector<1x5xf32>
    %21 = tpu.reciprocal %2 : vector<8x5xf32> -> vector<8x5xf32>
    %22 = vector.broadcast %20 : vector<1x5xf32> to vector<8x5xf32>
    %23 = arith.mulf %22, %21 : vector<8x5xf32>
    %24 = arith.subf %19, %23 : vector<8x5xf32>
    %cst_18 = arith.constant dense<0xFF800000> : vector<8xf32>
    %25 = vector.multi_reduction <maximumf>, %24, %cst_18 [1] : vector<8x5xf32> to vector<8xf32>
    %26 = vector.shape_cast %25 : vector<8xf32> to vector<8x1xf32>
    %27 = vector.broadcast %26 : vector<8x1xf32> to vector<8x5xf32>
    %28 = arith.subf %24, %27 : vector<8x5xf32>
    %29 = math.exp %28 : vector<8x5xf32>
    %cst_19 = arith.constant dense<0.000000e+00> : vector<8xf32>
    %30 = vector.multi_reduction <add>, %29, %cst_19 [1] : vector<8x5xf32> to vector<8xf32>
    %31 = vector.shape_cast %30 : vector<8xf32> to vector<8x1xf32>
    %32 = tpu.reciprocal %31 : vector<8x1xf32> -> vector<8x1xf32>
    %33 = vector.broadcast %32 : vector<8x1xf32> to vector<8x5xf32>
    %34 = arith.mulf %29, %33 : vector<8x5xf32>
    %c0_20 = arith.constant 0 : index
    %c0_21 = arith.constant 0 : index
    %35 = vector.load %arg9[%c0_20, %c0_21] : memref<8x5xf32, #tpu.memory_space<vmem>>, vector<8x5xf32>
    tpu.vector_store %arg9[%c0_20, %c0_21], %34 {strides = array<i32>} : memref<8x5xf32, #tpu.memory_space<vmem>>, vector<8x5xf32>,
    return
  }
  func.func @transform_0(%arg0: i32) -> (i32, i32) {
    %c0_i32 = arith.constant 0 : i32
    %c0_i32_0 = arith.constant 0 : i32
    return %arg0, %c0_i32 : i32, i32
  }
  func.func @transform_1(%arg0: i32) -> (i32, i32) {
    %c0_i32 = arith.constant 0 : i32
    %c0_i32_0 = arith.constant 0 : i32
    return %arg0, %c0_i32 : i32, i32
  }
  func.func @transform_2(%arg0: i32) -> (i32, i32) {
    %c0_i32 = arith.constant 0 : i32
    %c0_i32_0 = arith.constant 0 : i32
    %c0_i32_1 = arith.constant 0 : i32
    return %c0_i32, %c0_i32_0 : i32, i32
  }
  func.func @transform_3(%arg0: i32) -> (i32, i32) {
    %c0_i32 = arith.constant 0 : i32
    %c0_i32_0 = arith.constant 0 : i32
    %c0_i32_1 = arith.constant 0 : i32
    return %c0_i32, %c0_i32_0 : i32, i32
  }
  func.func @transform_4(%arg0: i32) -> (i32, i32) {
    %c0_i32 = arith.constant 0 : i32
    %c0_i32_0 = arith.constant 0 : i32
    %c0_i32_1 = arith.constant 0 : i32
    return %c0_i32, %c0_i32_0 : i32, i32
  }
  func.func @transform_5(%arg0: i32) -> (i32, i32) {
    %c0_i32 = arith.constant 0 : i32
    %c0_i32_0 = arith.constant 0 : i32
    %c0_i32_1 = arith.constant 0 : i32
    return %c0_i32, %c0_i32_0 : i32, i32
  }
  func.func @transform_6(%arg0: i32) -> (i32, i32) {
    %c0_i32 = arith.constant 0 : i32
    %c0_i32_0 = arith.constant 0 : i32
    %c0_i32_1 = arith.constant 0 : i32
    return %c0_i32, %c0_i32_0 : i32, i32
  }
  func.func @transform_7(%arg0: i32) -> (i32, i32) {
    %c0_i32 = arith.constant 0 : i32
    %c0_i32_0 = arith.constant 0 : i32
    %c0_i32_1 = arith.constant 0 : i32
    return %c0_i32, %c0_i32_0 : i32, i32
  }
  func.func @transform_8(%arg0: i32) -> (i32, i32) {
    %c0_i32 = arith.constant 0 : i32
    %c0_i32_0 = arith.constant 0 : i32
    return %arg0, %c0_i32 : i32, i32
  }
}

</mosaic_0001>

<bundles_post_ra>
// kernel: tpu_custom_call.1
= control target key start
LH: loop header
LB: loop body
LE: loop exit
PB: predicated region body
PF: predicated region fallthrough
CT: control target
= control target key end

     0   :  { %s789_s27 = smov 0   ;;  %s860_s0 = inlined_call_operand.vmem [shape: f32[16,10], index: 0, kind: input, shape index: {}]   ;;  %s861_s1 = inlined_call_operand.vmem [shape: f32[16,5], index: 1, kind: input, shape index: {}]   ;;  %s862_s2 = inlined_call_operand.vmem [shape: bf16[10,128], index: 2, kind: input, shape index: {}]   ;;  %s863_s3 = inlined_call_operand.vmem [shape: bf16[5,128], index: 3, kind: input, shape index: {}]   ;;  %s864_s4 = inlined_call_operand.vmem [shape: f32[1,128], index: 4, kind: input, shape index: {}]   ;;  %s865_s5 = inlined_call_operand.vmem [shape: bf16[128,5], index: 5, kind: input, shape index: {}]   ;;  %s866_s6 = inlined_call_operand.vmem [shape: f32[1,5], index: 6, kind: input, shape index: {}]   ;;  %s867_s7 = inlined_call_operand.vmem [shape: f32[1,5], index: 7, kind: input, shape index: {}]   ;;  %s868_s8 = inlined_call_operand.vmem [shape: f32[16,5], index: 8, kind: output, shape index: {}]  }
   0x1 LB: > { %s638_s28 = sadd.s32 4294967295, %s739_s27   ;;  %p642_p0 = scmp.ge.s32.totalorder %s739_s27, 1  ;;  %s739_s27 = sphi %s789_s27, %s18_s27  }
   0x2   : > { %p270_p1 = scmp.lt.s32.totalorder %s739_s27, 3 }
   0x4   : > { %p271_p2 = pnand %p642_p0, %p270_p1 }
   0x5   : > { %p306_p3 = scmp.lt.s32.totalorder (!%p271_p2), %s638_s28, 1 }
   0x6   : > { %274 = sbr.rel (%p271_p2) target bundleno = 738 (0x2e2), region = 52 }
   0xb   : > { %v325_v0 = vld [vmem:[%s863_s3] sm:$0x7]  ;;  %vm330_vm0 = vcmask 1041408   ;;  %vm331_vm1 = vcmask 1042432   ;;  %v741_v1 = vmov 0.0   ;;  %v742_v2 = vmov 65535  }
   0xc   : > { %675 = vmatprep.subr.bf16.mxu1 %v741_v1  ;;  %v332_v3 = vsel %vm330_vm0, 4294967295, %v742_v2  ;;  %687 = vmatprep.subr.bf16.mxu0 %v741_v1  ;;  %vm743_vm2 = vmmov 0   ;;  %v718_v5 = vld [vmem:[%s862_s2] sm:$0x1f]   ;;  %s870_s28 = smov (!%p306_p3, %s638_s28), 1  ;;  %v719_v7 = vld [vmem:[%s865_s5 + $0x38] sm:$0xff]  }
   0xd   : > { %v333_v4 = vsel %vm331_vm1, %v332_v3, 0  ;;  %677 = vmatprep.mubr.msk.bf16.mxu1 %vm743_vm2, %v741_v1  ;;  %703 = vmatprep.mubr.msk.bf16.mxu0 %vm743_vm2, %v741_v1  ;;  %s808_s13 = sshll.u32 %s870_s28, 3  ;;  %vm386_vm3 = vcmask 1044480   ;;  %v720_v8 = vld [vmem:[%s865_s5 + $0x30] sm:$0xff]   ;;  %vm326_vm4 = vcmask 39936   ;;  %v721_v12 = vld [vmem:[%s865_s5 + $0x28] sm:$0xff]  }
   0xe   : > { %v335_v6 = vand.u32 %v333_v4, %v325_v0  ;;  %s313_s16 = scalar_lea.vmem %s861_s1, %s808_s13  ;;  %688 = vmatpush3.bf16.msra.mxu0 %v719_v7  ;;  %v388_v11 = vsel %vm386_vm3, %v718_v5, 0  ;;  %s309_s21 = scalar_lea.vmem %s860_s0, %s808_s13  ;;  %v722_v15 = vld [vmem:[%s865_s5 + $0x20] sm:$0xff]   ;;  %vm382_vm5 = vcmask 80896   ;;  %v723_v16 = vld [vmem:[%s865_s5 + $0x18] sm:$0xff]   ;;  %v724_v17 = vld [vmem:[%s865_s5 + $0x10] sm:$0xff]  }
   0xf   : > { %v321_v9 = vld [vmem:[%s313_s16] sm:$0xff]  ;;  %689 = vmatprep.subr.bf16.mxu0 %v741_v1  ;;  %v725_v18 = vld [vmem:[%s865_s5 + $0x8] sm:$0xff]   ;;  %s317_s22 = scalar_lea.vmem %s868_s8, %s808_s13 }
  0x10   : > { %676 = vmatpush3.bf16.msra.mxu1 %v335_v6  ;;  %v324_v10 = vpack.c.bf16 %v321_v9, %v321_v9  ;;  %v319_v13 = vld [vmem:[%s309_s21] sm:$0xff]  ;;  %727 = vrcp.f32 %v321_v9 }
  0x11   : > { %681 = vmatprep.subr.bf16.mxu1 %v741_v1  ;;  %v320_v14 = vpack.c.bf16 %v319_v13, %v319_v13  ;;  %v726_v19 = vld [vmem:[%s865_s5] sm:$0xff]  }
  0x12   : > { %690 = vmatpush3.bf16.msra.mxu0 %v720_v8  ;;  %v649_v25 = vld [vmem:[%s864_s4] ss:$0 sm:$0xff] }
  0x13   : > { %678 = vmatmul.mubr.msk.bf16.vlgmr.msra.gmra.mxu1 %vm326_vm4, %v324_v10  ;;  %691 = vmatprep.subr.bf16.mxu0 %v741_v1  ;;  %v659_v34 = vld [vmem:[%s867_s7] ss:$0 sm:$0xff] }
  0x14   : > { %682 = vmatpush3.bf16.msra.mxu1 %v388_v11  ;;  %683 = vmatprep.mubr.msk.bf16.mxu1 %vm743_vm2, %v741_v1  ;;  %v650_v35 = vld [vmem:[%s866_s6] ss:$0 sm:$0xff] }
  0x16   : > { %692 = vmatpush3.bf16.msra.mxu0 %v721_v12 }
  0x17   : > { %693 = vmatprep.subr.bf16.mxu0 %v741_v1 }
  0x1a   : > { %694 = vmatpush3.bf16.msra.mxu0 %v722_v15 }
  0x1b   : > { %684 = vmatmul.mubr.msk.bf16.vlgmr.msra.gmra.mxu1 %vm382_vm5, %v320_v14  ;;  %695 = vmatprep.subr.bf16.mxu0 %v741_v1 }
  0x1d   : > { %v728_v33 = vpop.eup %727 }
  0x1e   : > { %696 = vmatpush3.bf16.msra.mxu0 %v723_v16  ;;  %v559_v36 = vmul.f32 %v728_v33, %v659_v34 }
  0x1f   : > { %697 = vmatprep.subr.bf16.mxu0 %v741_v1 }
  0x22   : > { %698 = vmatpush3.bf16.msra.mxu0 %v724_v17 }
  0x23   : > { %699 = vmatprep.subr.bf16.mxu0 %v741_v1 }
  0x26   : > { %700 = vmatpush3.bf16.msra.mxu0 %v725_v18 }
  0x27   : > { %701 = vmatprep.subr.bf16.mxu0 %v741_v1 }
  0x2a   : > { %702 = vmatpush3.bf16.msra.mxu0 %v726_v19 }
  0xd3   : > { %v371_v20 = vpop.f32.mrf.mxu1 }
  0xd5   : > { %v679_v21 = vpop.f32.mrf.mxu1 }
  0xd7   : > { %v374_v22 = vpop.f32.mrf.mxu1 }
  0xd9   : > { %v680_v23 = vpop.f32.mrf.mxu1 }
  0xdb   : > { %v424_v24 = vpop.f32.mrf.mxu1 }
  0xdc   : > { %v425_v26 = vadd.f32 %v424_v24, %v371_v20 }
  0xdd   : > { %v685_v27 = vpop.f32.mrf.mxu1 }
  0xde   : > { %v437_v28 = vadd.f32 %v649_v25, %v425_v26 }
  0xdf   : > { %v427_v29 = vpop.f32.mrf.mxu1 }
  0xe0   : > { %v438_v30 = vmax.f32 %v437_v28, 0.0 }
  0xe1   : > { %v686_v31 = vpop.f32.mrf.mxu1 }
  0xe2   : > { %v439_v32 = vpack.c.bf16 %v438_v30, %v438_v30 }
  0xe4   : > { %704 = vmatmul.mubr.bf16.vlgmr.msra.gmra.mxu0 %v439_v32 }
 0x1a4   : > { %v545_v37 = vpop.f32.mrf.mxu0 }
 0x1a5   : > { %v546_v38 = vadd.f32 %v650_v35, %v545_v37 }
 0x1a6   : > { %v705_v39 = vpop.f32.mrf.mxu0 }
 0x1a7   : > { %v560_v40 = vsub.f32 %v546_v38, %v559_v36 }
 0x1a8   : > { %v548_v41 = vpop.f32.mrf.mxu0 }
 0x1a9   : > { %v561_v42 = vsel %vm326_vm4, %v560_v40, -inf }
 0x1aa   : > { %562 = vmax.xlane.f32.xlu0 %v561_v42  ;;  %v706_v43 = vpop.f32.mrf.mxu0 }
 0x233   : > { %v563_v44 = vpop.xlane.xlu0 %562 }
 0x234   : > { %v564_v45 = vsub.f32 %v560_v40, %v563_v44 }
 0x236   : > { %v565_v46 = vmul.f32 1.442695, %v564_v45 }
 0x238   : > { %729 = vpow2.f32 %v565_v46 }
 0x245   : > { %v730_v47 = vpop.eup %729 }
 0x246   : > { %v567_v48 = vsel %vm326_vm4, %v730_v47, 0.0 }
 0x247   : > { %568 = vadd.xlane.f32.xlu0 %v567_v48 }
 0x2d0   : > { %v569_v49 = vpop.xlane.xlu0 %568 }
 0x2d1   : > { %731 = vrcp.f32 %v569_v49 }
 0x2de   : > { %v732_v50 = vpop.eup %731 }
 0x2df   : > { %v571_v51 = vmul.f32 %v732_v50, %v730_v47 }
 0x2e1   : > { %572 = vst.msk [vmem:[%s317_s22] sm:$0xff] %vm326_vm4, %v571_v51 }
 0x2e2 PF: > { %s18_s27 = sadd.s32 1, %s739_s27  }
 0x2e3   : > { %p15_p4 = scmp.ge.s32.totalorder %s18_s27, 4  }
 0x2e5   :  { %17 = sbr.rel (!%p15_p4) target bundleno = 1 (0x1), region = 85 }

</bundles_post_ra>
